<compile_context>
chip_gen: v7x
topology: tpu7x:2x2x1
jax: 0.10.0
libtpu: 0.0.40
codegen_flags: <defaults>
</compile_context>

<pallas_src>
import numpy as np
import jax
import jax.numpy as jnp
from jax.experimental import pallas as pl
from jax.experimental.pallas import tpu as pltpu

# ---------------- synthetic config ----------------
VISUAL_DIM = 32
RANDOM_Z_DIM = 8
ENC_EMB_DIM = 32
ENC_N_CONVS = 3
ENC_KERNEL = 5
VIDEO_SAMPLES = 1          # per_frame=True
BATCH = 2

CIN0 = VISUAL_DIM + RANDOM_Z_DIM                      # encoder_dim_with_z = 40
BN_EPS = 1e-5
BN_EVAL_SCALE = float(1.0 / np.sqrt(1.0 + BN_EPS))    # eval BatchNorm1d with init stats
DEC_N_CONVS = 3
DEC_K, DEC_STRIDE, DEC_PAD = 5, 2, 2

# per-net decoder length schedule: 32 -> 16 -> 8 -> 4
_dec_ls = []
_L = ENC_EMB_DIM
for _ in range(DEC_N_CONVS):
    _Lo = (_L + 2 * DEC_PAD - DEC_K) // DEC_STRIDE + 1
    _dec_ls.append((_L, _Lo))
    _L = _Lo
DEC_LS = tuple(_dec_ls)
N_MODAL_FREQ = DEC_LS[-1][1]                          # 4

N_LAYERS = ENC_N_CONVS + DEC_N_CONVS                  # 6 fused layers
HW = 128                                              # uniform padded hidden width (1 vreg of lanes)
BIAS_ROW_0 = VISUAL_DIM + 2 * RANDOM_Z_DIM            # 48: bias/ones row of the layer-0 block
OUT_W = 2 * N_MODAL_FREQ                              # 8 = [gains | dampings]


# ---------------- Pallas kernel: fused gain + damping Frequency_Net forward ----------------
def _modal_response_kernel(x_ref, zg_ref, zd_ref, w_ref, out_ref):
    """Both Frequency_Nets evaluated simultaneously; 6 x [dot (bias via ones lane), ReLU].

    Layer 0 (encoder conv 0, centre tap, BN folded): x is loaded once and hits the stacked
    [Wx_gain | Wx_damp] row block; z_gain / z_damp hit their own row blocks; the bias row
    also seeds the ones lane so every later layer's bias rides the MXU op.
    Layers 1-2: encoder convs (T==1 centre-tap matmul, block-diagonal gain|damping).
    Layers 3-5: stride-2 decoder convs as precomputed block-diagonal banded matrices.
    """
    x0 = x_ref[:, 0, :]                                   # (TB, 32) visual features
    zg = zg_ref[...]                                      # (TB, 8)  gain-net z draw
    zd = zd_ref[...]                                      # (TB, 8)  damping-net z draw
    h = (jnp.dot(x0, w_ref[0, 0:VISUAL_DIM, :], preferred_element_type=jnp.float32)
         + jnp.dot(zg, w_ref[0, VISUAL_DIM:VISUAL_DIM + RANDOM_Z_DIM, :],
                   preferred_element_type=jnp.float32)
         + jnp.dot(zd, w_ref[0, VISUAL_DIM + RANDOM_Z_DIM:BIAS_ROW_0, :],
                   preferred_element_type=jnp.float32)
         + w_ref[0, BIAS_ROW_0:BIAS_ROW_0 + 1, :])        # folded-BN bias + '1' for ones lane
    h = jnp.maximum(h, 0.0)
    for l in range(1, N_LAYERS):
        h = jnp.maximum(jnp.dot(h, w_ref[l], preferred_element_type=jnp.float32), 0.0)
    out_ref[...] = h[:, :OUT_W]                           # (TB, 8) = [gains | dampings]


def _modal_response_pallas(x, z_gain, z_damp, w_slab):
    B = x.shape[0]
    TB = B if B <= 128 else 128
    assert B % TB == 0, "for B > 128, pad the batch to a multiple of 128"
    grid = (B // TB,)
    macs = (VISUAL_DIM * 2 * ENC_EMB_DIM + 2 * RANDOM_Z_DIM * ENC_EMB_DIM
            + (ENC_N_CONVS - 1) * 2 * ENC_EMB_DIM * ENC_EMB_DIM
            + sum(2 * L * Lo for (L, Lo) in DEC_LS))
    cost = pl.CostEstimate(
        flops=2 * macs * B,
        transcendentals=0,
        bytes_accessed=4 * (B * (VISUAL_DIM + 2 * RANDOM_Z_DIM + OUT_W) + int(w_slab.size)))
    return pl.pallas_call(
        _modal_response_kernel,
        out_shape=jax.ShapeDtypeStruct((B, OUT_W), jnp.float32),
        grid_spec=pltpu.PrefetchScalarGridSpec(
            num_scalar_prefetch=0,
            grid=grid,
            in_specs=[
                pl.BlockSpec((TB, 1, VISUAL_DIM), lambda i: (i, 0, 0)),
                pl.BlockSpec((TB, RANDOM_Z_DIM), lambda i: (i, 0)),
                pl.BlockSpec((TB, RANDOM_Z_DIM), lambda i: (i, 0)),
                pl.BlockSpec((N_LAYERS, HW, HW), lambda i: (0, 0, 0)),   # single packed slab
            ],
            out_specs=pl.BlockSpec((TB, OUT_W), lambda i: (i, 0)),
        ),
        compiler_params=pltpu.CompilerParams(dimension_semantics=("parallel",)),
        cost_estimate=cost,
    )(x, z_gain, z_damp, w_slab)


# ---------------- glue: Modal_Response_Net wrapper ----------------
@jax.jit
def modal_response_net_forward(x, w_slab, z_gain, z_damp):
    """x: (B, T=1, visual_dim); z_*: (B, random_z_dim) -- the encoders' torch.randn draws."""
    B = x.shape[0]
    out = _modal_response_pallas(x, z_gain, z_damp, w_slab)        # (B, 8)
    pred_gains = out[:, :N_MODAL_FREQ].reshape(B, 1, N_MODAL_FREQ)
    pred_dampings = out[:, N_MODAL_FREQ:].reshape(B, 1, N_MODAL_FREQ)
    return pred_gains, pred_dampings


# ---------------- parameter init (per-net, mirrors init_weights('normal', 0.02)) ----------------
def init_frequency_net_params(key):
    """Conv weights ~ N(0, 0.02), biases = 0, BN at defaults (folded later)."""
    ks = jax.random.split(key, 4)
    enc_w_full = [
        0.02 * jax.random.normal(ks[0], (ENC_EMB_DIM, CIN0, ENC_KERNEL), jnp.float32),
        0.02 * jax.random.normal(ks[1], (ENC_EMB_DIM, ENC_EMB_DIM, ENC_KERNEL), jnp.float32),
        0.02 * jax.random.normal(ks[2], (ENC_EMB_DIM, ENC_EMB_DIM, ENC_KERNEL), jnp.float32),
    ]
    # With T == 1 and padding = (k-1)/2, only the centre tap ever touches real (non-padded)
    # input, so each encoder Conv1d is exactly a matmul with W[:, :, k//2].
    enc_w = [jnp.transpose(w[:, :, ENC_KERNEL // 2]) for w in enc_w_full]   # (Cin, Cout)
    enc_b = [jnp.zeros((1, ENC_EMB_DIM), jnp.float32) for _ in range(ENC_N_CONVS)]
    dec_w = 0.02 * jax.random.normal(ks[3], (DEC_N_CONVS, DEC_K), jnp.float32)  # 1->1 chan taps
    dec_b = jnp.zeros((DEC_N_CONVS,), jnp.float32)
    return (enc_w[0], enc_b[0], enc_w[1], enc_b[1], enc_w[2], enc_b[2], dec_w, dec_b)


# ---------------- parameter prep: fold BN, block-diagonalize, pack ONE slab ----------------
def _dec_band(taps, L):
    """(L, Lout) banded matrix equal to Conv1d(1->1, k=5, stride=2, pad=2) with given taps."""
    Lout = (L + 2 * DEC_PAD - DEC_K) // DEC_STRIDE + 1
    band = np.zeros((L, Lout), np.float32)
    for j in range(Lout):
        for k in range(DEC_K):
            i = DEC_STRIDE * j + k - DEC_PAD
            if 0 <= i < L:
                band[i, j] += taps[k]
    return band


def prepare_fused_params(gain_params, damp_params):
    """One-time host-side prep: returns the single (N_LAYERS, HW, HW) weight slab."""
    # Hard-wired assumptions behind the centre-tap collapse and the band matrices.
    assert VIDEO_SAMPLES == 1, "centre-tap encoder collapse requires per_frame=True (T == 1)"
    assert ENC_KERNEL % 2 == 1 and DEC_STRIDE == 2 and DEC_PAD == 2 and DEC_K == 5
    gw0, gb0, gw1, gb1, gw2, gb2, gdw, gdb = [np.asarray(p, np.float32) for p in gain_params]
    dw0, db0, dw1, db1, dw2, db2, ddw, ddb = [np.asarray(p, np.float32) for p in damp_params]
    s = BN_EVAL_SCALE
    E, V, Z = ENC_EMB_DIM, VISUAL_DIM, RANDOM_Z_DIM
    W = np.zeros((N_LAYERS, HW, HW), np.float32)

    # Layer 0: rows = [x | z_gain | z_damp | bias+ones], cols = [gain hidden | damp hidden | 1].
    W[0, :V, :E] = gw0[:V, :] * s
    W[0, :V, E:2 * E] = dw0[:V, :] * s
    W[0, V:V + Z, :E] = gw0[V:, :] * s
    W[0, V + Z:V + 2 * Z, E:2 * E] = dw0[V:, :] * s
    W[0, BIAS_ROW_0, :E] = gb0.reshape(-1) * s
    W[0, BIAS_ROW_0, E:2 * E] = db0.reshape(-1) * s
    W[0, BIAS_ROW_0, 2 * E] = 1.0                        # seed the ones lane

    # Encoder layers 1-2: block-diagonal (gain | damping); bias on the ones-lane row.
    for l, (gw, gb, dw, db) in enumerate(((gw1, gb1, dw1, db1), (gw2, gb2, dw2, db2)), start=1):
        W[l, :E, :E] = gw * s
        W[l, E:2 * E, E:2 * E] = dw * s
        W[l, 2 * E, :E] = gb.reshape(-1) * s
        W[l, 2 * E, E:2 * E] = db.reshape(-1) * s
        W[l, 2 * E, 2 * E] = 1.0                         # propagate ones lane

    # Decoder layers: block-diagonal banded stride-2 conv matrices; input ones lane at col 2L.
    for d, (L, Lout) in enumerate(DEC_LS):
        l = ENC_N_CONVS + d
        W[l, :L, :Lout] = _dec_band(gdw[d], L) * s
        W[l, L:2 * L, Lout:2 * Lout] = _dec_band(ddw[d], L) * s
        W[l, 2 * L, :Lout] = gdb[d] * s
        W[l, 2 * L, Lout:2 * Lout] = ddb[d] * s
        if l < N_LAYERS - 1:
            W[l, 2 * L, 2 * Lout] = 1.0                  # last layer drops the ones lane

    return jnp.asarray(W)


# ---------------- pure-JAX reference (verification only, per-net, unfused) ----------------
def _frequency_net_ref(x, z, params):
    w0, b0, w1, b1, w2, b2, dec_w, dec_b = params
    h = jnp.concatenate([x[:, 0, :], z], axis=1)
    for w, b in ((w0, b0), (w1, b1), (w2, b2)):
        h = jnp.maximum((h @ w + b) * BN_EVAL_SCALE, 0.0)
    for layer in range(DEC_N_CONVS):
        L = h.shape[-1]
        Lout = (L + 2 * DEC_PAD - DEC_K) // DEC_STRIDE + 1
        hp = jnp.pad(h, ((0, 0), (DEC_PAD, DEC_PAD)))
        cols = []
        for j in range(Lout):
            acc = jnp.zeros((h.shape[0],), jnp.float32)
            for k in range(DEC_K):
                acc = acc + dec_w[layer, k] * hp[:, DEC_STRIDE * j + k]
            cols.append(acc + dec_b[layer])
        h = jnp.maximum(jnp.stack(cols, axis=1) * BN_EVAL_SCALE, 0.0)
    return h.reshape(h.shape[0], 1, N_MODAL_FREQ)


if __name__ == "__main__":
    key = jax.random.PRNGKey(0)
    k_x, k_zg, k_zd, k_gain, k_damp = jax.random.split(key, 5)

    # inputs: precomputed visual features (B, video_samples=1, visual_dim)
    x = jax.random.normal(k_x, (BATCH, VIDEO_SAMPLES, VISUAL_DIM), jnp.float32)
    # Each Frequency_Net's Encoder draws its own torch.randn(B, random_z_dim).
    z_gain = jax.random.normal(k_zg, (BATCH, RANDOM_Z_DIM), jnp.float32)
    z_damp = jax.random.normal(k_zd, (BATCH, RANDOM_Z_DIM), jnp.float32)

    gain_params = init_frequency_net_params(k_gain)
    damp_params = init_frequency_net_params(k_damp)
    w_slab = prepare_fused_params(gain_params, damp_params)     # one-time prep, single slab

    pred_gains, pred_dampings = modal_response_net_forward(x, w_slab, z_gain, z_damp)
    jax.block_until_ready((pred_gains, pred_dampings))

    assert pred_gains.shape == (BATCH, 1, N_MODAL_FREQ)
    assert pred_dampings.shape == (BATCH, 1, N_MODAL_FREQ)

    ref_g = _frequency_net_ref(x, z_gain, gain_params)
    ref_d = _frequency_net_ref(x, z_damp, damp_params)
    np.testing.assert_allclose(np.asarray(pred_gains), np.asarray(ref_g), atol=1e-5, rtol=1e-4)
    np.testing.assert_allclose(np.asarray(pred_dampings), np.asarray(ref_d), atol=1e-5, rtol=1e-4)

    print("KERNEL_OK")
</pallas_src>

<mosaic_0001>
module attributes {stable_mosaic.version = 11 : i64} {
  func.func @_modal_response_kernel(%arg0: i32, %arg1: memref<2x1x32xf32, #tpu.memory_space<vmem>>, %arg2: memref<2x8xf32, #tpu.memory_space<vmem>>, %arg3: memref<2x8xf32, #tpu.memory_space<vmem>>, %arg4: memref<6x128x128xf32, #tpu.memory_space<vmem>>, %arg5: memref<2x8xf32, #tpu.memory_space<vmem>>) attributes {dimension_semantics = [#tpu.dimension_semantics<parallel>], iteration_bounds = array<i64: 1>, scalar_prefetch = 0 : i64, scratch_operands = 0 : i64, tpu.core_type = #tpu.core_type<tc>, window_params = [{transform_indices = @transform_0, window_bounds = array<i64: 2, 1, 32>}, {transform_indices = @transform_1, window_bounds = array<i64: 2, 8>}, {transform_indices = @transform_2, window_bounds = array<i64: 2, 8>}, {pipeline_mode = #tpu.pipeline_mode<synchronous>, transform_indices = @transform_3, window_bounds = array<i64: 6, 128, 128>}, {transform_indices = @transform_4, window_bounds = array<i64: 2, 8>}]} {
    %c0 = arith.constant 0 : index
    %c0_0 = arith.constant 0 : index
    %c0_1 = arith.constant 0 : index
    %0 = vector.load %arg1[%c0, %c0_0, %c0_1] : memref<2x1x32xf32, #tpu.memory_space<vmem>>, vector<2x1x32xf32>
    %1 = vector.shape_cast %0 : vector<2x1x32xf32> to vector<2x32xf32>
    %c0_2 = arith.constant 0 : index
    %c0_3 = arith.constant 0 : index
    %2 = vector.load %arg2[%c0_2, %c0_3] : memref<2x8xf32, #tpu.memory_space<vmem>>, vector<2x8xf32>
    %c0_4 = arith.constant 0 : index
    %c0_5 = arith.constant 0 : index
    %3 = vector.load %arg3[%c0_4, %c0_5] : memref<2x8xf32, #tpu.memory_space<vmem>>, vector<2x8xf32>
    %c0_6 = arith.constant 0 : index
    %c0_7 = arith.constant 0 : index
    %c0_8 = arith.constant 0 : index
    %4 = vector.load %arg4[%c0_6, %c0_7, %c0_8] : memref<6x128x128xf32, #tpu.memory_space<vmem>>, vector<1x32x128xf32>
    %5 = vector.shape_cast %4 : vector<1x32x128xf32> to vector<32x128xf32>
    %cst = arith.constant dense<0.000000e+00> : vector<2x128xf32>
    %6 = tpu.matmul %1, %5, %cst {dimension_numbers = #tpu.dot_dimension_numbers<[1], [0], [0], [1], [0, 0, 1, 1], [], []>} : vector<2x32xf32>, vector<32x128xf32>, vector<2x128xf32> -> vector<2x128xf32>
    %c0_9 = arith.constant 0 : index
    %c32 = arith.constant 32 : index
    %c0_10 = arith.constant 0 : index
    %7 = vector.load %arg4[%c0_9, %c32, %c0_10] : memref<6x128x128xf32, #tpu.memory_space<vmem>>, vector<1x8x128xf32>
    %8 = vector.shape_cast %7 : vector<1x8x128xf32> to vector<8x128xf32>
    %cst_11 = arith.constant dense<0.000000e+00> : vector<2x128xf32>
    %9 = tpu.matmul %2, %8, %cst_11 {dimension_numbers = #tpu.dot_dimension_numbers<[1], [0], [0], [1], [0, 0, 1, 1], [], []>} : vector<2x8xf32>, vector<8x128xf32>, vector<2x128xf32> -> vector<2x128xf32>
    %10 = arith.addf %6, %9 : vector<2x128xf32>
    %c0_12 = arith.constant 0 : index
    %c40 = arith.constant 40 : index
    %c0_13 = arith.constant 0 : index
    %11 = vector.load %arg4[%c0_12, %c40, %c0_13] : memref<6x128x128xf32, #tpu.memory_space<vmem>>, vector<1x8x128xf32>
    %12 = vector.shape_cast %11 : vector<1x8x128xf32> to vector<8x128xf32>
    %cst_14 = arith.constant dense<0.000000e+00> : vector<2x128xf32>
    %13 = tpu.matmul %3, %12, %cst_14 {dimension_numbers = #tpu.dot_dimension_numbers<[1], [0], [0], [1], [0, 0, 1, 1], [], []>} : vector<2x8xf32>, vector<8x128xf32>, vector<2x128xf32> -> vector<2x128xf32>
    %14 = arith.addf %10, %13 : vector<2x128xf32>
    %c0_15 = arith.constant 0 : index
    %c48 = arith.constant 48 : index
    %c0_16 = arith.constant 0 : index
    %15 = vector.load %arg4[%c0_15, %c48, %c0_16] : memref<6x128x128xf32, #tpu.memory_space<vmem>>, vector<1x1x128xf32>
    %16 = vector.shape_cast %15 : vector<1x1x128xf32> to vector<1x128xf32>
    %17 = vector.broadcast %16 : vector<1x128xf32> to vector<2x128xf32>
    %18 = arith.addf %14, %17 : vector<2x128xf32>
    %cst_17 = arith.constant 0.000000e+00 : f32
    %19 = vector.broadcast %cst_17 : f32 to vector<2x128xf32>
    %20 = arith.maximumf %18, %19 : vector<2x128xf32>
    %c1 = arith.constant 1 : index
    %c0_18 = arith.constant 0 : index
    %c0_19 = arith.constant 0 : index
    %21 = vector.load %arg4[%c1, %c0_18, %c0_19] : memref<6x128x128xf32, #tpu.memory_space<vmem>>, vector<1x128x128xf32>
    %22 = vector.shape_cast %21 : vector<1x128x128xf32> to vector<128x128xf32>
    %cst_20 = arith.constant dense<0.000000e+00> : vector<2x128xf32>
    %23 = tpu.matmul %20, %22, %cst_20 {dimension_numbers = #tpu.dot_dimension_numbers<[1], [0], [0], [1], [0, 0, 1, 1], [], []>} : vector<2x128xf32>, vector<128x128xf32>, vector<2x128xf32> -> vector<2x128xf32>
    %cst_21 = arith.constant 0.000000e+00 : f32
    %24 = vector.broadcast %cst_21 : f32 to vector<2x128xf32>
    %25 = arith.maximumf %23, %24 : vector<2x128xf32>
    %c2 = arith.constant 2 : index
    %c0_22 = arith.constant 0 : index
    %c0_23 = arith.constant 0 : index
    %26 = vector.load %arg4[%c2, %c0_22, %c0_23] : memref<6x128x128xf32, #tpu.memory_space<vmem>>, vector<1x128x128xf32>
    %27 = vector.shape_cast %26 : vector<1x128x128xf32> to vector<128x128xf32>
    %cst_24 = arith.constant dense<0.000000e+00> : vector<2x128xf32>
    %28 = tpu.matmul %25, %27, %cst_24 {dimension_numbers = #tpu.dot_dimension_numbers<[1], [0], [0], [1], [0, 0, 1, 1], [], []>} : vector<2x128xf32>, vector<128x128xf32>, vector<2x128xf32> -> vector<2x128xf32>
    %cst_25 = arith.constant 0.000000e+00 : f32
    %29 = vector.broadcast %cst_25 : f32 to vector<2x128xf32>
    %30 = arith.maximumf %28, %29 : vector<2x128xf32>
    %c3 = arith.constant 3 : index
    %c0_26 = arith.constant 0 : index
    %c0_27 = arith.constant 0 : index
    %31 = vector.load %arg4[%c3, %c0_26, %c0_27] : memref<6x128x128xf32, #tpu.memory_space<vmem>>, vector<1x128x128xf32>
    %32 = vector.shape_cast %31 : vector<1x128x128xf32> to vector<128x128xf32>
    %cst_28 = arith.constant dense<0.000000e+00> : vector<2x128xf32>
    %33 = tpu.matmul %30, %32, %cst_28 {dimension_numbers = #tpu.dot_dimension_numbers<[1], [0], [0], [1], [0, 0, 1, 1], [], []>} : vector<2x128xf32>, vector<128x128xf32>, vector<2x128xf32> -> vector<2x128xf32>
    %cst_29 = arith.constant 0.000000e+00 : f32
    %34 = vector.broadcast %cst_29 : f32 to vector<2x128xf32>
    %35 = arith.maximumf %33, %34 : vector<2x128xf32>
    %c4 = arith.constant 4 : index
    %c0_30 = arith.constant 0 : index
    %c0_31 = arith.constant 0 : index
    %36 = vector.load %arg4[%c4, %c0_30, %c0_31] : memref<6x128x128xf32, #tpu.memory_space<vmem>>, vector<1x128x128xf32>
    %37 = vector.shape_cast %36 : vector<1x128x128xf32> to vector<128x128xf32>
    %cst_32 = arith.constant dense<0.000000e+00> : vector<2x128xf32>
    %38 = tpu.matmul %35, %37, %cst_32 {dimension_numbers = #tpu.dot_dimension_numbers<[1], [0], [0], [1], [0, 0, 1, 1], [], []>} : vector<2x128xf32>, vector<128x128xf32>, vector<2x128xf32> -> vector<2x128xf32>
    %cst_33 = arith.constant 0.000000e+00 : f32
    %39 = vector.broadcast %cst_33 : f32 to vector<2x128xf32>
    %40 = arith.maximumf %38, %39 : vector<2x128xf32>
    %c5 = arith.constant 5 : index
    %c0_34 = arith.constant 0 : index
    %c0_35 = arith.constant 0 : index
    %41 = vector.load %arg4[%c5, %c0_34, %c0_35] : memref<6x128x128xf32, #tpu.memory_space<vmem>>, vector<1x128x128xf32>
    %42 = vector.shape_cast %41 : vector<1x128x128xf32> to vector<128x128xf32>
    %cst_36 = arith.constant dense<0.000000e+00> : vector<2x128xf32>
    %43 = tpu.matmul %40, %42, %cst_36 {dimension_numbers = #tpu.dot_dimension_numbers<[1], [0], [0], [1], [0, 0, 1, 1], [], []>} : vector<2x128xf32>, vector<128x128xf32>, vector<2x128xf32> -> vector<2x128xf32>
    %cst_37 = arith.constant 0.000000e+00 : f32
    %44 = vector.broadcast %cst_37 : f32 to vector<2x128xf32>
    %45 = arith.maximumf %43, %44 : vector<2x128xf32>
    %46 = vector.extract_strided_slice %45 {offsets = [0, 0], sizes = [2, 8], strides = [1, 1]} : vector<2x128xf32> to vector<2x8xf32>
    %c0_38 = arith.constant 0 : index
    %c0_39 = arith.constant 0 : index
    %47 = vector.load %arg5[%c0_38, %c0_39] : memref<2x8xf32, #tpu.memory_space<vmem>>, vector<2x8xf32>
    tpu.vector_store %arg5[%c0_38, %c0_39], %46 {strides = array<i32>} : memref<2x8xf32, #tpu.memory_space<vmem>>, vector<2x8xf32>,
    return
  }
  func.func @transform_0(%arg0: i32) -> (i32, i32, i32) {
    %c0_i32 = arith.constant 0 : i32
    %c0_i32_0 = arith.constant 0 : i32
    %c0_i32_1 = arith.constant 0 : i32
    return %arg0, %c0_i32, %c0_i32_0 : i32, i32, i32
  }
  func.func @transform_1(%arg0: i32) -> (i32, i32) {
    %c0_i32 = arith.constant 0 : i32
    %c0_i32_0 = arith.constant 0 : i32
    return %arg0, %c0_i32 : i32, i32
  }
  func.func @transform_2(%arg0: i32) -> (i32, i32) {
    %c0_i32 = arith.constant 0 : i32
    %c0_i32_0 = arith.constant 0 : i32
    return %arg0, %c0_i32 : i32, i32
  }
  func.func @transform_3(%arg0: i32) -> (i32, i32, i32) {
    %c0_i32 = arith.constant 0 : i32
    %c0_i32_0 = arith.constant 0 : i32
    %c0_i32_1 = arith.constant 0 : i32
    %c0_i32_2 = arith.constant 0 : i32
    return %c0_i32, %c0_i32_0, %c0_i32_1 : i32, i32, i32
  }
  func.func @transform_4(%arg0: i32) -> (i32, i32) {
    %c0_i32 = arith.constant 0 : i32
    %c0_i32_0 = arith.constant 0 : i32
    return %arg0, %c0_i32 : i32, i32
  }
}

</mosaic_0001>

<bundles_post_ra>
// kernel: modal_response_net_forward.1
= control target key start
LH: loop header
LB: loop body
LE: loop exit
PB: predicated region body
PF: predicated region fallthrough
CT: control target
= control target key end

     0   :  { %9 = vsyncpa [#allocation3], 0  ;;  %s1356_s0 = inlined_call_operand.hbm [shape: f32[2,1,32], index: 0, kind: input, shape index: {}]   ;;  %s1357_s1 = inlined_call_operand.vmem [shape: f32[2,8], index: 1, kind: input, shape index: {}]   ;;  %s1358_s2 = inlined_call_operand.vmem [shape: f32[2,8], index: 2, kind: input, shape index: {}]   ;;  %s1359_s3 = inlined_call_operand.hbm [shape: f32[6,128,128], index: 3, kind: input, shape index: {}]   ;;  %s1360_s4 = inlined_call_operand.vmem [shape: f32[2,8], index: 4, kind: output, shape index: {}]  }
   0x1   :  { %10 = vsyncpa [#allocation5], 0  ;;  %s1226_s15 = smov [#allocation2]   ;;  %s1178_s19 = scalar_lea.hbm %s1356_s0, 32 }
   0x2   :  { %s16_s16 = sshll.u32 %s1226_s15, 4  ;;  %p1179_p0 = scmp.ne.s32.totalorder %s1356_s0, %s1178_s19  ;;  %s17_s16 = int_to_ptr.vmem [resolvable:$true] %s16_s16 }
   0x3   :  { %p1182_p1 = scmp.lt.u32.totalorder %s1178_s19, %s1356_s0 }
   0x5   :  { %p1184_p2 = pnand %p1182_p1, %p1179_p0 }
   0x7   :  { %1187 = shalt.err (!%p1184_p2)
}
   0x8   :  { %s1188_s24 = scalar_lea.vmem %s17_s16, 32  ;;  %p1193_p4 = scmp.lt.s32.totalorder %s17_s16, %s17_s16 }
   0x9   :  { %p1189_p3 = scmp.ne.s32.totalorder %s17_s16, %s1188_s24  ;;  %p1194_p5 = scmp.lt.s32.totalorder %s1188_s24, %s1188_s24 }
   0xb   :  { %p1195_p6 = por %p1194_p5, %p1193_p4 }
   0xd   :  { %p1196_p7 = pnand %p1195_p6, %p1189_p3 }
   0xf   :  { %1199 = shalt.err (!%p1196_p7)
}
  0x10   :  { %s1227_s25 = smov 16   ;;  %s1228_s26 = smov 1  }
  0x11   :  { %22 = dma.hbm_to_vmem [thread:$0]  %s1356_s0, 32, %s17_s16, [#allocation3], %s1227_s25, %s1227_s25, %s1228_s26  }
  0x12   :  { %s1229_s29 = smov [#allocation4]   ;;  %s1200_s7 = scalar_lea.hbm %s1359_s3, 12288 }
  0x13   :  { %s32_s30 = sshll.u32 %s1229_s29, 4  ;;  %p1201_p8 = scmp.ne.s32.totalorder %s1359_s3, %s1200_s7  ;;  %s33_s30 = int_to_ptr.vmem [resolvable:$true] %s32_s30 }
  0x14   :  { %p1204_p9 = scmp.lt.u32.totalorder %s1200_s7, %s1359_s3 }
  0x16   :  { %p1206_p10 = pnand %p1204_p9, %p1201_p8 }
  0x18   :  { %1209 = shalt.err (!%p1206_p10)
}
  0x19   :  { %s1210_s12 = scalar_lea.vmem %s33_s30, 12288  ;;  %p1215_p12 = scmp.lt.s32.totalorder %s33_s30, %s33_s30 }
  0x1a   :  { %p1211_p11 = scmp.ne.s32.totalorder %s33_s30, %s1210_s12  ;;  %p1216_p13 = scmp.lt.s32.totalorder %s1210_s12, %s1210_s12 }
  0x1c   :  { %p1217_p0 = por %p1216_p13, %p1215_p12 }
  0x1e   :  { %p1218_p1 = pnand %p1217_p0, %p1211_p11 }
  0x20   :  { %1221 = shalt.err (!%p1218_p1)
}
  0x21   :  { %s1230_s0 = smov 128   ;;  %s1231_s13 = smov 8  }
  0x22   :  { %38 = dma.hbm_to_vmem [thread:$0]  %s1359_s3, 12288, %s33_s30, [#allocation5], %s1230_s0, %s1230_s0, %s1231_s13  }
  0x23   :  { %1222 = dma.done.wait [#allocation3], 32  }
  0x24   :  { %1223 = vsyncadd [#allocation3], 4294967264 }
  0x25   :  { %1224 = dma.done.wait [#allocation5], 12288  }
  0x26   :  { %1225 = vsyncadd [#allocation5], 4294955008  ;;  %v1232_v0 = vmov 0.0   ;;  %vm1233_vm0 = vmmov 0   ;;  %v134_v1 = vlaneseq  ;;  %v1234_v2 = vmov 1966171168  }
  0x27   :  { %846 = vmatprep.subr.mxu1 %v1232_v0  ;;  %848 = vmatprep.mubr.msk.f32.mxu1 %vm1233_vm0, %v1232_v0  ;;  %v132_v3 = vunpack.c.l.s4 %v1234_v2  ;;  %v1235_v4 = vmov 0.0|0.0   ;;  %vm54_vm1 = vcmask 64512   ;;  %v53_v7 = vld [vmem:[#allocation4 + $0x20] sm:$0xff]  ;;  %v47_v8 = vld [vmem:[%s1357_s1] sm:$0x3]  ;;  %v50_v10 = vld [vmem:[#allocation4 + $0x8] sm:$0xff] }
  0x28   :  { %1048 = vmatprep.subr.bf16.mxu0 %v1235_v4  ;;  %899 = vmatprep.mubr.msk.f32.mxu0 %vm1233_vm0, %v1232_v0  ;;  %v135_v6 = vshrl.u32 %v134_v1, 7  ;;  %v49_v9 = vld [vmem:[#allocation4] sm:$0xff]  ;;  %v51_v11 = vld [vmem:[#allocation4 + $0x10] sm:$0xff]  ;;  %v52_v12 = vld [vmem:[#allocation4 + $0x18] sm:$0xff]  ;;  %vm145_vm2 = vcmask 261120   ;;  %vm740_vm3 = vcmask 58368  }
  0x29   :  { %v133_v5 = vunpack.c.0.s8 %v132_v3  ;;  %847 = vmatpush3.msra.mxu1 %v53_v7  ;;  %v1043_v14 = vpack.c.bf16 %v50_v10, %v49_v9  ;;  %v45_v15 = vld [vmem:[#allocation2] sm:$0x1]  ;;  %v46_v16 = vld [vmem:[#allocation2 + $0x1] sm:$0x1]  ;;  %v301_v18 = vld [vmem:[#allocation4 + $0x80] sm:$0xff]  ;;  %v1046_v20 = vpack.c.bf16 %v52_v12, %v51_v11 }
  0x2a   :  { %849 = vmatmul.mubr.msk.f32.vlgmr.msra.gmra.mrb[0].mxu1 %vm54_vm1, %v47_v8  ;;  %1042 = vmatprep.subr.bf16.mxu1 %v1235_v4  ;;  %v130_v17 = vcombine.low %v45_v15, %v46_v16  ;;  %v302_v19 = vld [vmem:[#allocation4 + $0x88] sm:$0xff]  ;;  %v303_v22 = vld [vmem:[#allocation4 + $0x90] sm:$0xff]  ;;  %v304_v23 = vld [vmem:[#allocation4 + $0x98] sm:$0xff] }
  0x2b   :  { %v136_v13 = vsub.s32 %v133_v5, %v135_v6  ;;  %859 = vmatprep.mubr.msk.f32.mxu1 %vm1233_vm0, %v1232_v0  ;;  %1044 = vmatpush3.bf16.msra.mxu1 %v1043_v14  ;;  %v1049_v21 = vpack.c.bf16 %v302_v19, %v301_v18  ;;  %v1052_v25 = vpack.c.bf16 %v304_v23, %v303_v22  ;;  %v305_v27 = vld [vmem:[#allocation4 + $0xa0] sm:$0xff]  ;;  %v306_v28 = vld [vmem:[#allocation4 + $0xa8] sm:$0xff]  ;;  %v48_v31 = vld [vmem:[%s1358_s2] sm:$0x3] }
  0x2c   :  { %1045 = vmatprep.subr.bf16.mxu1 %v1235_v4  ;;  %v218_v29 = vld [vmem:[#allocation4 + $0x28] sm:$0xff]  ;;  %v1055_v30 = vpack.c.bf16 %v306_v28, %v305_v27  ;;  %v307_v32 = vld [vmem:[#allocation4 + $0xb0] sm:$0xff]  ;;  %v308_v33 = vld [vmem:[#allocation4 + $0xb8] sm:$0xff] }
  0x2d   :  { %v137_v24 = vrot.slane %v130_v17, %v136_v13  ;;  %1050 = vmatpush3.bf16.msra.mxu0 %v1049_v21  ;;  %v1058_v34 = vpack.c.bf16 %v308_v33, %v307_v32  ;;  %v309_v35 = vld [vmem:[#allocation4 + $0xc0] sm:$0xff]  ;;  %v310_v36 = vld [vmem:[#allocation4 + $0xc8] sm:$0xff]  ;;  %v311_v38 = vld [vmem:[#allocation4 + $0xd0] sm:$0xff] }
  0x2e   :  { %1051 = vmatprep.subr.bf16.mxu0 %v1235_v4  ;;  %v1061_v37 = vpack.c.bf16 %v310_v36, %v309_v35  ;;  %v312_v39 = vld [vmem:[#allocation4 + $0xd8] sm:$0xff]  ;;  %v313_v41 = vld [vmem:[#allocation4 + $0xe0] sm:$0xff]  ;;  %v314_v42 = vld [vmem:[#allocation4 + $0xe8] sm:$0xff] }
  0x2f   :  { %v144_v26 = vrot.slane %v137_v24, %v136_v13  ;;  %1047 = vmatpush3.bf16.msra.mxu1 %v1046_v20  ;;  %v1064_v40 = vpack.c.bf16 %v312_v39, %v311_v38  ;;  %v1067_v43 = vpack.c.bf16 %v314_v42, %v313_v41  ;;  %v315_v44 = vld [vmem:[#allocation4 + $0xf0] sm:$0xff]  ;;  %v316_v45 = vld [vmem:[#allocation4 + $0xf8] sm:$0xff]  ;;  %v389_v47 = vld [vmem:[#allocation4 + $0x100] sm:$0xff] }
  0x30   :  { %862 = vmatprep.subr.mxu1 %v1232_v0  ;;  %v1070_v46 = vpack.c.bf16 %v316_v45, %v315_v44  ;;  %v390_v48 = vld [vmem:[#allocation4 + $0x108] sm:$0xff]  ;;  %v391_v49 = vld [vmem:[#allocation4 + $0x110] sm:$0xff]  ;;  %v392_v51 = vld [vmem:[#allocation4 + $0x118] sm:$0xff] }
  0x31   :  { %1053 = vmatpush3.bf16.msra.mxu0 %v1052_v25  ;;  %v1073_v50 = vpack.c.bf16 %v390_v48, %v389_v47  ;;  %v1076_v52 = vpack.c.bf16 %v392_v51, %v391_v49  ;;  %v393_v53 = vld [vmem:[#allocation4 + $0x120] sm:$0xff]  ;;  %v394_v54 = vld [vmem:[#allocation4 + $0x128] sm:$0xff]  ;;  %v395_v56 = vld [vmem:[#allocation4 + $0x130] sm:$0xff] }
  0x32   :  { %860 = vmatmul.mubr.msk.f32.vlgmr.msra.gmra.mrb[2].mxu1 %vm145_vm2, %v144_v26  ;;  %1054 = vmatprep.subr.bf16.mxu0 %v1235_v4  ;;  %v1079_v55 = vpack.c.bf16 %v394_v54, %v393_v53  ;;  %v396_v57 = vld [vmem:[#allocation4 + $0x138] sm:$0xff]  ;;  %v397_v59 = vld [vmem:[#allocation4 + $0x140] sm:$0xff]  ;;  %v398_v60 = vld [vmem:[#allocation4 + $0x148] sm:$0xff] }
  0x33   :  { %863 = vmatpush3.msra.mxu1 %v218_v29  ;;  %864 = vmatprep.mubr.msk.f32.mxu1 %vm1233_vm0, %v1232_v0  ;;  %v1082_v58 = vpack.c.bf16 %v396_v57, %v395_v56  ;;  %v1085_v61 = vpack.c.bf16 %v398_v60, %v397_v59  ;;  %v399_v62 = vld [vmem:[#allocation4 + $0x150] sm:$0xff]  ;;  %v400_v63 = vld [vmem:[#allocation4 + $0x158] sm:$0xff]  ;;  %v401_v2 = vld [vmem:[#allocation4 + $0x160] sm:$0xff] }
  0x34   :  { %1072 = vmatprep.subr.bf16.mxu1 %v1235_v4  ;;  %v1088_v1 = vpack.c.bf16 %v400_v63, %v399_v62  ;;  %v402_v3 = vld [vmem:[#allocation4 + $0x168] sm:$0xff]  ;;  %v751_v12 = vld [vmem:[#allocation4 + $0x30] ss:$0 sm:$0xff]  ;;  %v404_v18 = vld [vmem:[#allocation4 + $0x178] sm:$0xff] }
  0x35   :  { %1056 = vmatpush3.bf16.msra.mxu0 %v1055_v30  ;;  %v1091_v5 = vpack.c.bf16 %v402_v3, %v401_v2  ;;  %v403_v17 = vld [vmem:[#allocation4 + $0x170] sm:$0xff]  ;;  %v477_v20 = vld [vmem:[#allocation4 + $0x180] sm:$0xff]  ;;  %v478_v21 = vld [vmem:[#allocation4 + $0x188] sm:$0xff] }
  0x36   :  { %865 = vmatmul.mubr.msk.f32.vlgmr.msra.gmra.mrb[4].mxu1 %vm54_vm1, %v48_v31  ;;  %1057 = vmatprep.subr.bf16.mxu0 %v1235_v4  ;;  %v1094_v19 = vpack.c.bf16 %v404_v18, %v403_v17  ;;  %v479_v22 = vld [vmem:[#allocation4 + $0x190] sm:$0xff]  ;;  %v1097_v23 = vpack.c.bf16 %v478_v21, %v477_v20  ;;  %v480_v24 = vld [vmem:[#allocation4 + $0x198] sm:$0xff]  ;;  %v481_v26 = vld [vmem:[#allocation4 + $0x1a0] sm:$0xff] }
  0x37   :  { %934 = vmatprep.mubr.msk.f32.mxu1 %vm1233_vm0, %v1232_v0  ;;  %1074 = vmatpush3.bf16.msra.mxu1 %v1073_v50  ;;  %v1100_v25 = vpack.c.bf16 %v480_v24, %v479_v22  ;;  %v482_v27 = vld [vmem:[#allocation4 + $0x1a8] sm:$0xff]  ;;  %v483_v29 = vld [vmem:[#allocation4 + $0x1b0] sm:$0xff]  ;;  %v484_v30 = vld [vmem:[#allocation4 + $0x1b8] sm:$0xff] }
  0x38   :  { %1075 = vmatprep.subr.bf16.mxu1 %v1235_v4  ;;  %v1103_v28 = vpack.c.bf16 %v482_v27, %v481_v26  ;;  %v1106_v31 = vpack.c.bf16 %v484_v30, %v483_v29  ;;  %v485_v32 = vld [vmem:[#allocation4 + $0x1c0] sm:$0xff]  ;;  %v486_v33 = vld [vmem:[#allocation4 + $0x1c8] sm:$0xff]  ;;  %v487_v35 = vld [vmem:[#allocation4 + $0x1d0] sm:$0xff] }
  0x39   :  { %1059 = vmatpush3.bf16.msra.mxu0 %v1058_v34  ;;  %v1109_v34 = vpack.c.bf16 %v486_v33, %v485_v32  ;;  %v488_v36 = vld [vmem:[#allocation4 + $0x1d8] sm:$0xff]  ;;  %v489_v38 = vld [vmem:[#allocation4 + $0x1e0] sm:$0xff]  ;;  %v490_v39 = vld [vmem:[#allocation4 + $0x1e8] sm:$0xff] }
  0x3a   :  { %1060 = vmatprep.subr.bf16.mxu0 %v1235_v4  ;;  %v491_v44 = vld [vmem:[#allocation4 + $0x1f0] sm:$0xff]  ;;  %v492_v45 = vld [vmem:[#allocation4 + $0x1f8] sm:$0xff]  ;;  %v565_v47 = vld [vmem:[#allocation4 + $0x200] sm:$0xff] }
  0x3b   :  { %1077 = vmatpush3.bf16.msra.mxu1 %v1076_v52  ;;  %v566_v48 = vld [vmem:[#allocation4 + $0x208] sm:$0xff]  ;;  %v567_v49 = vld [vmem:[#allocation4 + $0x210] sm:$0xff]  ;;  %v568_v51 = vld [vmem:[#allocation4 + $0x218] sm:$0xff] }
  0x3c   :  { %1078 = vmatprep.subr.bf16.mxu1 %v1235_v4  ;;  %v1121_v50 = vpack.c.bf16 %v566_v48, %v565_v47  ;;  %v1124_v52 = vpack.c.bf16 %v568_v51, %v567_v49  ;;  %v569_v53 = vld [vmem:[#allocation4 + $0x220] sm:$0xff]  ;;  %v570_v54 = vld [vmem:[#allocation4 + $0x228] sm:$0xff]  ;;  %v571_v56 = vld [vmem:[#allocation4 + $0x230] sm:$0xff] }
  0x3d   :  { %1062 = vmatpush3.bf16.msra.mxu0 %v1061_v37  ;;  %v1112_v37 = vpack.c.bf16 %v488_v36, %v487_v35  ;;  %v572_v57 = vld [vmem:[#allocation4 + $0x238] sm:$0xff]  ;;  %v573_v59 = vld [vmem:[#allocation4 + $0x240] sm:$0xff]  ;;  %v574_v60 = vld [vmem:[#allocation4 + $0x248] sm:$0xff] }
  0x3e   :  { %1063 = vmatprep.subr.bf16.mxu0 %v1235_v4  ;;  %v575_v62 = vld [vmem:[#allocation4 + $0x250] sm:$0xff]  ;;  %v576_v63 = vld [vmem:[#allocation4 + $0x258] sm:$0xff]  ;;  %v577_v2 = vld [vmem:[#allocation4 + $0x260] sm:$0xff] }
  0x3f   :  { %1080 = vmatpush3.bf16.msra.mxu1 %v1079_v55  ;;  %v1127_v55 = vpack.c.bf16 %v570_v54, %v569_v53  ;;  %v578_v3 = vld [vmem:[#allocation4 + $0x268] sm:$0xff]  ;;  %v657_v18 = vld [vmem:[#allocation4 + $0x2a0] sm:$0xff]  ;;  %v660_v21 = vld [vmem:[#allocation4 + $0x2b8] sm:$0xff] }
  0x40   :  { %1081 = vmatprep.subr.bf16.mxu1 %v1235_v4  ;;  %v662_v24 = vld [vmem:[#allocation4 + $0x2c8] sm:$0xff]  ;;  %v663_v26 = vld [vmem:[#allocation4 + $0x2d0] sm:$0xff]  ;;  %v664_v27 = vld [vmem:[#allocation4 + $0x2d8] sm:$0xff] }
  0x41   :  { %1065 = vmatpush3.bf16.msra.mxu0 %v1064_v40  ;;  %v1115_v40 = vpack.c.bf16 %v490_v39, %v489_v38  ;;  %v665_v29 = vld [vmem:[#allocation4 + $0x2e0] sm:$0xff]  ;;  %v666_v30 = vld [vmem:[#allocation4 + $0x2e8] sm:$0xff]  ;;  %v667_v35 = vld [vmem:[#allocation4 + $0x2f0] sm:$0xff] }
  0x42   :  { %1066 = vmatprep.subr.bf16.mxu0 %v1235_v4  ;;  %v668_v36 = vld [vmem:[#allocation4 + $0x2f8] sm:$0xff] }
  0x43   :  { %1083 = vmatpush3.bf16.msra.mxu1 %v1082_v58  ;;  %v1130_v58 = vpack.c.bf16 %v572_v57, %v571_v56 }
  0x44   :  { %1084 = vmatprep.subr.bf16.mxu1 %v1235_v4 }
  0x45   :  { %1068 = vmatpush3.bf16.msra.mxu0 %v1067_v43 }
  0x46   :  { %1069 = vmatprep.subr.bf16.mxu0 %v1235_v4 }
  0x47   :  { %1086 = vmatpush3.bf16.msra.mxu1 %v1085_v61  ;;  %v1133_v61 = vpack.c.bf16 %v574_v60, %v573_v59 }
  0x48   :  { %1087 = vmatprep.subr.bf16.mxu1 %v1235_v4 }
  0x49   :  { %1071 = vmatpush3.bf16.msra.mxu0 %v1070_v46  ;;  %v1118_v46 = vpack.c.bf16 %v492_v45, %v491_v44 }
  0x4a   :  { %1096 = vmatprep.subr.bf16.mxu0 %v1235_v4 }
  0x4b   :  { %1089 = vmatpush3.bf16.msra.mxu1 %v1088_v1  ;;  %v1136_v1 = vpack.c.bf16 %v576_v63, %v575_v62 }
  0x4c   :  { %1090 = vmatprep.subr.bf16.mxu1 %v1235_v4 }
  0x4f   :  { %1092 = vmatpush3.bf16.msra.mxu1 %v1091_v5  ;;  %v1139_v5 = vpack.c.bf16 %v578_v3, %v577_v2 }
  0x50   :  { %1093 = vmatprep.subr.bf16.mxu1 %v1235_v4 }
  0x53   :  { %1095 = vmatpush3.bf16.msra.mxu1 %v1094_v19  ;;  %v658_v19 = vld [vmem:[#allocation4 + $0x2a8] sm:$0xff] }
  0x54   :  { %1120 = vmatprep.subr.bf16.mxu1 %v1235_v4  ;;  %v1151_v20 = vpack.c.bf16 %v658_v19, %v657_v18 }
  0xfd   :  { %v124_v6 = vpop.f32.mrb[0].mxu1 }
  0xfe   :  { %v850_v7 = vpop.f32.mrb[1].mxu1 }
 0x105   :  { %v214_v8 = vpop.f32.mrb[2].mxu1 }
 0x106   :  { %v215_v9 = vadd.f32 %v214_v8, %v124_v6  ;;  %v861_v10 = vpop.f32.mrb[3].mxu1 }
 0x107   :  { %v580_v10 = vld [vmem:[#allocation4 + $0x278] sm:$0xff] }
 0x109   :  { %v288_v11 = vpop.f32.mrb[4].mxu1 }
 0x10a   :  { %v292_v13 = vadd.f32 %v288_v11, %v215_v9  ;;  %v866_v14 = vpop.f32.mrb[5].mxu1  ;;  %v579_v9 = vld [vmem:[#allocation4 + $0x270] sm:$0xff] }
 0x10b   :  { %v1142_v11 = vpack.c.bf16 %v580_v10, %v579_v9  ;;  %v655_v14 = vld [vmem:[#allocation4 + $0x290] sm:$0xff] }
 0x10c   :  { %v298_v15 = vadd.f32 %v751_v12, %v292_v13  ;;  %v653_v12 = vld [vmem:[#allocation4 + $0x280] sm:$0xff]  ;;  %v654_v13 = vld [vmem:[#allocation4 + $0x288] sm:$0xff] }
 0x10e   :  { %v299_v16 = vmax.f32 %v298_v15, 0.0  ;;  %v1145_v15 = vpack.c.bf16 %v654_v13, %v653_v12 }
 0x110   :  { %900 = vmatmul.mubr.f32.vlgmr.msra.gmra.mrb[0].mxu0 %v299_v16  ;;  %v656_v16 = vld [vmem:[#allocation4 + $0x298] sm:$0xff] }
 0x111   :  { %969 = vmatprep.mubr.msk.f32.mxu0 %vm1233_vm0, %v1232_v0  ;;  %1098 = vmatpush3.bf16.msra.mxu0 %v1097_v23  ;;  %v1148_v17 = vpack.c.bf16 %v656_v16, %v655_v14  ;;  %v661_v23 = vld [vmem:[#allocation4 + $0x2c0] sm:$0xff] }
 0x112   :  { %1099 = vmatprep.subr.bf16.mxu0 %v1235_v4 }
 0x115   :  { %1101 = vmatpush3.bf16.msra.mxu0 %v1100_v25  ;;  %v1157_v25 = vpack.c.bf16 %v662_v24, %v661_v23 }
 0x116   :  { %1102 = vmatprep.subr.bf16.mxu0 %v1235_v4 }
 0x119   :  { %1104 = vmatpush3.bf16.msra.mxu0 %v1103_v28  ;;  %v1160_v28 = vpack.c.bf16 %v664_v27, %v663_v26 }
 0x11a   :  { %1105 = vmatprep.subr.bf16.mxu0 %v1235_v4 }
 0x11d   :  { %1107 = vmatpush3.bf16.msra.mxu0 %v1106_v31  ;;  %v1163_v31 = vpack.c.bf16 %v666_v30, %v665_v29 }
 0x11e   :  { %1108 = vmatprep.subr.bf16.mxu0 %v1235_v4 }
 0x121   :  { %1110 = vmatpush3.bf16.msra.mxu0 %v1109_v34 }
 0x122   :  { %1111 = vmatprep.subr.bf16.mxu0 %v1235_v4 }
 0x125   :  { %1113 = vmatpush3.bf16.msra.mxu0 %v1112_v37  ;;  %v1166_v37 = vpack.c.bf16 %v668_v36, %v667_v35 }
 0x126   :  { %1114 = vmatprep.subr.bf16.mxu0 %v1235_v4 }
 0x129   :  { %1116 = vmatpush3.bf16.msra.mxu0 %v1115_v40 }
 0x12a   :  { %1117 = vmatprep.subr.bf16.mxu0 %v1235_v4 }
 0x12d   :  { %1119 = vmatpush3.bf16.msra.mxu0 %v1118_v46 }
 0x12e   :  { %1144 = vmatprep.subr.bf16.mxu0 %v1235_v4 }
 0x1e3   :  { %v383_v41 = vpop.f32.mrb[0].mxu0 }
 0x1e4   :  { %v387_v42 = vmax.f32 %v383_v41, 0.0  ;;  %v901_v43 = vpop.f32.mrb[1].mxu0 }
 0x1e6   :  { %935 = vmatmul.mubr.f32.vlgmr.msra.gmra.mrb[6].mxu1 %v387_v42 }
 0x1e7   :  { %1004 = vmatprep.mubr.msk.f32.mxu1 %vm1233_vm0, %v1232_v0  ;;  %1122 = vmatpush3.bf16.msra.mxu1 %v1121_v50 }
 0x1e8   :  { %1123 = vmatprep.subr.bf16.mxu1 %v1235_v4 }
 0x1eb   :  { %1125 = vmatpush3.bf16.msra.mxu1 %v1124_v52 }
 0x1ec   :  { %1126 = vmatprep.subr.bf16.mxu1 %v1235_v4 }
 0x1ef   :  { %1128 = vmatpush3.bf16.msra.mxu1 %v1127_v55 }
 0x1f0   :  { %1129 = vmatprep.subr.bf16.mxu1 %v1235_v4 }
 0x1f3   :  { %1131 = vmatpush3.bf16.msra.mxu1 %v1130_v58 }
 0x1f4   :  { %1132 = vmatprep.subr.bf16.mxu1 %v1235_v4 }
 0x1f7   :  { %1134 = vmatpush3.bf16.msra.mxu1 %v1133_v61 }
 0x1f8   :  { %1135 = vmatprep.subr.bf16.mxu1 %v1235_v4 }
 0x1fb   :  { %1137 = vmatpush3.bf16.msra.mxu1 %v1136_v1 }
 0x1fc   :  { %1138 = vmatprep.subr.bf16.mxu1 %v1235_v4 }
 0x1ff   :  { %1140 = vmatpush3.bf16.msra.mxu1 %v1139_v5 }
 0x200   :  { %1141 = vmatprep.subr.bf16.mxu1 %v1235_v4 }
 0x203   :  { %1143 = vmatpush3.bf16.msra.mxu1 %v1142_v11 }
 0x2b9   :  { %v471_v6 = vpop.f32.mrb[6].mxu1 }
 0x2ba   :  { %v475_v7 = vmax.f32 %v471_v6, 0.0  ;;  %v936_v8 = vpop.f32.mrb[7].mxu1 }
 0x2bc   :  { %970 = vmatmul.mubr.f32.vlgmr.msra.gmra.mrb[2].mxu0 %v475_v7 }
 0x2bd   :  { %1039 = vmatprep.mubr.msk.f32.mxu0 %vm1233_vm0, %v1232_v0  ;;  %1146 = vmatpush3.bf16.msra.mxu0 %v1145_v15  ;;  %v659_v0 = vld [vmem:[#allocation4 + $0x2b0] sm:$0xff] }
 0x2be   :  { %1147 = vmatprep.subr.bf16.mxu0 %v1235_v4  ;;  %v1154_v22 = vpack.c.bf16 %v660_v21, %v659_v0 }
 0x2c1   :  { %1149 = vmatpush3.bf16.msra.mxu0 %v1148_v17 }
 0x2c2   :  { %1150 = vmatprep.subr.bf16.mxu0 %v1235_v4 }
 0x2c5   :  { %1152 = vmatpush3.bf16.msra.mxu0 %v1151_v20 }
 0x2c6   :  { %1153 = vmatprep.subr.bf16.mxu0 %v1235_v4 }
 0x2c9   :  { %1155 = vmatpush3.bf16.msra.mxu0 %v1154_v22 }
 0x2ca   :  { %1156 = vmatprep.subr.bf16.mxu0 %v1235_v4 }
 0x2cd   :  { %1158 = vmatpush3.bf16.msra.mxu0 %v1157_v25 }
 0x2ce   :  { %1159 = vmatprep.subr.bf16.mxu0 %v1235_v4 }
 0x2d1   :  { %1161 = vmatpush3.bf16.msra.mxu0 %v1160_v28 }
 0x2d2   :  { %1162 = vmatprep.subr.bf16.mxu0 %v1235_v4 }
 0x2d5   :  { %1164 = vmatpush3.bf16.msra.mxu0 %v1163_v31 }
 0x2d6   :  { %1165 = vmatprep.subr.bf16.mxu0 %v1235_v4 }
 0x2d9   :  { %1167 = vmatpush3.bf16.msra.mxu0 %v1166_v37 }
 0x38f   :  { %v559_v32 = vpop.f32.mrb[2].mxu0 }
 0x390   :  { %v563_v33 = vmax.f32 %v559_v32, 0.0  ;;  %v971_v34 = vpop.f32.mrb[3].mxu0 }
 0x392   :  { %1005 = vmatmul.mubr.f32.vlgmr.msra.gmra.mrb[8].mxu1 %v563_v33 }
 0x465   :  { %v647_v38 = vpop.f32.mrb[8].mxu1 }
 0x466   :  { %v651_v39 = vmax.f32 %v647_v38, 0.0  ;;  %v1006_v40 = vpop.f32.mrb[9].mxu1 }
 0x468   :  { %1040 = vmatmul.mubr.f32.vlgmr.msra.gmra.mrb[4].mxu0 %v651_v39 }
 0x53b   :  { %v735_v41 = vpop.f32.mrb[4].mxu0 }
 0x53c   :  { %v739_v42 = vmax.f32 %v735_v41, 0.0  ;;  %v1041_v43 = vpop.f32.mrb[5].mxu0 }
 0x53e   :  { %741 = vst.msk [vmem:[%s1360_s4] sm:$0x3] %vm740_vm3, %v739_v42 }
 0x53f   :  { %746 = vsyncpa [#allocation3], 1 }
 0x540   :  { %747 = vsyncpa [#allocation5], 1 }

</bundles_post_ra>
